<compile_context>
chip_gen: v7x
topology: tpu7x:2x2x1
jax: 0.10.0
libtpu: 0.0.40
codegen_flags: <defaults>
</compile_context>

<pallas_src>
import functools

import jax
import jax.numpy as jnp
from jax.experimental import pallas as pl
from jax.experimental.pallas import tpu as pltpu

EPS = 1e-5          # nn.BatchNorm1d default eps
NEG_SLOPE = 0.2     # LeakyReLU(0.2)
FUSED_M_CAP = 1024  # largest padded batch kept fully VMEM-resident (fused path)


def _round_up(v, m):
    return (v + m - 1) // m * m


def _vmem_limit(estimate_bytes):
    # generous headroom, floor at default-ish 32 MiB, cap at v7x physical 64 MiB
    return int(min(max(2 * estimate_bytes, 32 << 20), 64 << 20))


# ---------------------------------------------------------------------------
# Fused path: GEMM + BatchNorm (batch stats) + LeakyReLU in one kernel.
# Grid = (N tiles, K tiles); full (padded) batch lives in the accumulator.
# ---------------------------------------------------------------------------
def _fused_linear_bn_lrelu_kernel(x_ref, w_ref, g_ref, b_ref, o_ref, acc_ref,
                                  *, m_rows, batchnorm):
    k = pl.program_id(1)

    @pl.when(k == 0)
    def _():
        acc_ref[...] = jnp.zeros_like(acc_ref)

    acc_ref[...] += jnp.dot(x_ref[...], w_ref[...],
                            preferred_element_type=jnp.float32)

    @pl.when(k == pl.num_programs(1) - 1)
    def _():
        y = acc_ref[...]                       # (m_pad, tn), padded rows are 0
        g = g_ref[...]                         # (1, tn)
        b = b_ref[...]                         # (1, tn)
        if batchnorm:
            inv_m = 1.0 / m_rows               # static; padded rows contribute 0
            mean = jnp.sum(y, axis=0, keepdims=True) * inv_m
            ex2 = jnp.sum(y * y, axis=0, keepdims=True) * inv_m
            var = jnp.maximum(ex2 - mean * mean, 0.0)   # biased variance
            inv = jax.lax.rsqrt(var + EPS)
            scale = g * inv
            shift = b - mean * scale
        else:
            scale = g                          # ones
            shift = b                          # linear bias
        z = y * scale + shift
        o_ref[...] = jnp.where(z >= 0, z, NEG_SLOPE * z)


# ---------------------------------------------------------------------------
# Fallback pass 1: y = x @ w  (tiled M x K grid) + per-M-tile partial BN stats
# ---------------------------------------------------------------------------
def _matmul_stats_kernel(x_ref, w_ref, y_ref, stats_ref, acc_ref):
    k = pl.program_id(1)

    @pl.when(k == 0)
    def _():
        acc_ref[...] = jnp.zeros_like(acc_ref)

    acc_ref[...] += jnp.dot(x_ref[...], w_ref[...],
                            preferred_element_type=jnp.float32)

    @pl.when(k == pl.num_programs(1) - 1)
    def _():
        y = acc_ref[...]
        y_ref[...] = y
        # Partial BN stats for this M tile (single pass: sum and sum-of-squares).
        s = jnp.sum(y, axis=0, keepdims=True)        # (1, n_pad)
        sq = jnp.sum(y * y, axis=0, keepdims=True)   # (1, n_pad)
        rows = jax.lax.broadcasted_iota(jnp.int32, (8, y.shape[1]), 0)
        blk = jnp.where(rows == 0, s, jnp.where(rows == 1, sq, 0.0))
        stats_ref[...] = blk[None, :, :]             # (1, 8, n_pad)


# ---------------------------------------------------------------------------
# Fallback pass 2: out = leaky_relu(y * scale + shift)
# ---------------------------------------------------------------------------
def _scale_shift_lrelu_kernel(y_ref, scale_ref, shift_ref, o_ref):
    z = y_ref[...] * scale_ref[...] + shift_ref[...]
    o_ref[...] = jnp.where(z >= 0, z, NEG_SLOPE * z)


@functools.partial(jax.jit, static_argnames=("batchnorm",))
def linear_unit_forward(x, weight, bias, gamma, beta, *, batchnorm=True):
    """x: (M, in_features); weight: (out_features, in_features);
    bias/gamma/beta: (out_features,). Training-mode forward of LinearUnit."""
    M, K = x.shape
    N = weight.shape[0]

    # ---- padding / tile selection (lane-dense N, MXU-aligned K) -----------
    n_pad = _round_up(N, 128)
    k_pad = _round_up(K, 128)
    tk = k_pad if k_pad <= 512 else 512
    k_pad = _round_up(k_pad, tk)

    x_f = x.astype(jnp.float32)
    w_t = weight.astype(jnp.float32).T

    m8 = _round_up(M, 8)

    # ======================= fused single-pass path ========================
    if m8 <= FUSED_M_CAP:
        m_pad = m8
        tn = n_pad if n_pad <= 512 else 256
        n_pad = _round_up(n_pad, tn)
        nn, nk = n_pad // tn, k_pad // tk

        x_p = jnp.pad(x_f, ((0, m_pad - M), (0, k_pad - K)))
        w_p = jnp.pad(w_t, ((0, k_pad - K), (0, n_pad - N)))
        if batchnorm:
            # Linear bias is cancelled exactly by training-mode BN mean
            # subtraction, so it is intentionally not added.
            g_row = jnp.pad(gamma.astype(jnp.float32), (0, n_pad - N))
            b_row = jnp.pad(beta.astype(jnp.float32), (0, n_pad - N))
        else:
            g_row = jnp.ones((n_pad,), jnp.float32)
            b_row = jnp.pad(bias.astype(jnp.float32), (0, n_pad - N))

        vmem = _vmem_limit(4 * (2 * m_pad * tk + 2 * tk * tn + 4 * tn
                                + 3 * m_pad * tn))
        kern = functools.partial(_fused_linear_bn_lrelu_kernel,
                                 m_rows=float(M), batchnorm=batchnorm)
        out_pad = pl.pallas_call(
            kern,
            out_shape=jax.ShapeDtypeStruct((m_pad, n_pad), jnp.float32),
            grid_spec=pltpu.PrefetchScalarGridSpec(
                num_scalar_prefetch=0,
                grid=(nn, nk),
                in_specs=[pl.BlockSpec((m_pad, tk), lambda j, k: (0, k)),
                          pl.BlockSpec((tk, tn), lambda j, k: (k, j)),
                          pl.BlockSpec((1, tn), lambda j, k: (0, j)),
                          pl.BlockSpec((1, tn), lambda j, k: (0, j))],
                out_specs=pl.BlockSpec((m_pad, tn), lambda j, k: (0, j)),
                scratch_shapes=[pltpu.VMEM((m_pad, tn), jnp.float32)]),
            compiler_params=pltpu.CompilerParams(
                dimension_semantics=("parallel", "arbitrary"),
                vmem_limit_bytes=vmem),
        )(x_p, w_p, g_row.reshape(1, n_pad), b_row.reshape(1, n_pad))

        # TODO(synk): BatchNorm1d running_mean/running_var buffer updates
        # (training bookkeeping) are not produced; only the forward output is.
        return out_pad[:M, :N]

    # ====================== two-pass path (large batch) ====================
    tm_cap = 512 if n_pad <= 2048 else 256        # keep tiles sane on v7x VMEM
    tm = m8 if m8 <= tm_cap else tm_cap
    m_pad = _round_up(M, tm)
    nm, nk = m_pad // tm, k_pad // tk

    x_p = jnp.pad(x_f, ((0, m_pad - M), (0, k_pad - K)))
    w_p = jnp.pad(w_t, ((0, k_pad - K), (0, n_pad - N)))

    vmem1 = _vmem_limit(4 * (2 * tm * tk + 2 * tk * n_pad
                             + 3 * tm * n_pad + 16 * n_pad))
    y_pad, stats = pl.pallas_call(
        _matmul_stats_kernel,
        out_shape=(jax.ShapeDtypeStruct((m_pad, n_pad), jnp.float32),
                   jax.ShapeDtypeStruct((nm, 8, n_pad), jnp.float32)),
        grid_spec=pltpu.PrefetchScalarGridSpec(
            num_scalar_prefetch=0,
            grid=(nm, nk),
            in_specs=[pl.BlockSpec((tm, tk), lambda i, k: (i, k)),
                      pl.BlockSpec((tk, n_pad), lambda i, k: (k, 0))],
            out_specs=[pl.BlockSpec((tm, n_pad), lambda i, k: (i, 0)),
                       pl.BlockSpec((1, 8, n_pad), lambda i, k: (i, 0, 0))],
            scratch_shapes=[pltpu.VMEM((tm, n_pad), jnp.float32)]),
        compiler_params=pltpu.CompilerParams(
            dimension_semantics=("parallel", "arbitrary"),
            vmem_limit_bytes=vmem1),
    )(x_p, w_p)

    # ---- tiny cross-tile reduction -> per-channel scale/shift -------------
    if batchnorm:
        total = jnp.sum(stats[:, 0, :], axis=0)
        total_sq = jnp.sum(stats[:, 1, :], axis=0)
        mean = total / M
        var = jnp.maximum(total_sq / M - mean * mean, 0.0)   # biased variance
        inv = jax.lax.rsqrt(var + EPS)
        g = jnp.pad(gamma.astype(jnp.float32), (0, n_pad - N))
        b = jnp.pad(beta.astype(jnp.float32), (0, n_pad - N))
        scale = g * inv
        shift = b - mean * scale
    else:
        scale = jnp.ones((n_pad,), jnp.float32)
        shift = jnp.pad(bias.astype(jnp.float32), (0, n_pad - N))

    vmem2 = _vmem_limit(4 * (4 * tm * n_pad + 4 * n_pad))
    out_pad = pl.pallas_call(
        _scale_shift_lrelu_kernel,
        out_shape=jax.ShapeDtypeStruct((m_pad, n_pad), jnp.float32),
        grid_spec=pltpu.PrefetchScalarGridSpec(
            num_scalar_prefetch=0,
            grid=(nm,),
            in_specs=[pl.BlockSpec((tm, n_pad), lambda i: (i, 0)),
                      pl.BlockSpec((1, n_pad), lambda i: (0, 0)),
                      pl.BlockSpec((1, n_pad), lambda i: (0, 0))],
            out_specs=pl.BlockSpec((tm, n_pad), lambda i: (i, 0))),
        compiler_params=pltpu.CompilerParams(
            dimension_semantics=("parallel",),
            vmem_limit_bytes=vmem2),
    )(y_pad, scale.reshape(1, n_pad), shift.reshape(1, n_pad))

    return out_pad[:M, :N]


if __name__ == "__main__":
    key = jax.random.PRNGKey(0)
    kx, kw, kb, kg, kbe = jax.random.split(key, 5)

    batch, in_features, out_features = 8, 32, 16
    bound = 1.0 / (in_features ** 0.5)

    x = jax.random.normal(kx, (batch, in_features), dtype=jnp.float32)
    weight = jax.random.uniform(kw, (out_features, in_features), jnp.float32,
                                minval=-bound, maxval=bound)
    bias = jax.random.uniform(kb, (out_features,), jnp.float32,
                              minval=-bound, maxval=bound)
    gamma = 1.0 + 0.1 * jax.random.normal(kg, (out_features,), jnp.float32)
    beta = 0.1 * jax.random.normal(kbe, (out_features,), jnp.float32)

    # ---- batchnorm=True path (default LinearUnit config) ------------------
    y = linear_unit_forward(x, weight, bias, gamma, beta, batchnorm=True)
    jax.block_until_ready(y)
    assert y.shape == (batch, out_features), y.shape

    yl = x @ weight.T + bias
    mean = yl.mean(axis=0)
    var = ((yl - mean) ** 2).mean(axis=0)            # biased, like BN training
    yn = (yl - mean) / jnp.sqrt(var + EPS) * gamma + beta
    ref = jnp.where(yn >= 0, yn, NEG_SLOPE * yn)
    err = float(jnp.max(jnp.abs(y - ref)))
    assert jnp.allclose(y, ref, atol=1e-3, rtol=1e-3), err

    # ---- batchnorm=False path ---------------------------------------------
    y2 = linear_unit_forward(x, weight, bias, gamma, beta, batchnorm=False)
    jax.block_until_ready(y2)
    ref2 = jnp.where(yl >= 0, yl, NEG_SLOPE * yl)
    err2 = float(jnp.max(jnp.abs(y2 - ref2)))
    assert jnp.allclose(y2, ref2, atol=1e-3, rtol=1e-3), err2

    print("KERNEL_OK")
</pallas_src>

<mosaic_0001>
module attributes {stable_mosaic.version = 11 : i64} {
  func.func @_fused_linear_bn_lrelu_kernel(%arg0: i32, %arg1: i32, %arg2: memref<8x128xf32, #tpu.memory_space<vmem>>, %arg3: memref<128x128xf32, #tpu.memory_space<vmem>>, %arg4: memref<1x128xf32, #tpu.memory_space<vmem>>, %arg5: memref<1x128xf32, #tpu.memory_space<vmem>>, %arg6: memref<8x128xf32, #tpu.memory_space<vmem>>, %arg7: memref<8x128xf32, #tpu.memory_space<vmem>>) attributes {dimension_semantics = [#tpu.dimension_semantics<parallel>, #tpu.dimension_semantics<arbitrary>], iteration_bounds = array<i64: 1, 1>, scalar_prefetch = 0 : i64, scratch_operands = 1 : i64, tpu.core_type = #tpu.core_type<tc>, window_params = [{transform_indices = @transform_0, window_bounds = array<i64: 8, 128>}, {transform_indices = @transform_1, window_bounds = array<i64: 128, 128>}, {transform_indices = @transform_2, window_bounds = array<i64: 1, 128>}, {transform_indices = @transform_3, window_bounds = array<i64: 1, 128>}, {transform_indices = @transform_4, window_bounds = array<i64: 8, 128>}]} {
    %c0_i32 = arith.constant 0 : i32
    %0 = arith.cmpi eq, %arg1, %c0_i32 : i32
    %1 = arith.extui %0 : i1 to i32
    %c0_i32_0 = arith.constant 0 : i32
    %2 = arith.cmpi ne, %1, %c0_i32_0 : i32
    scf.if %2 {
      %cst_10 = arith.constant 0.000000e+00 : f32
      %12 = vector.broadcast %cst_10 : f32 to vector<8x128xf32>
      %c0_11 = arith.constant 0 : index
      %c0_12 = arith.constant 0 : index
      %13 = vector.load %arg7[%c0_11, %c0_12] : memref<8x128xf32, #tpu.memory_space<vmem>>, vector<8x128xf32>
      tpu.vector_store %arg7[%c0_11, %c0_12], %12 {strides = array<i32>} : memref<8x128xf32, #tpu.memory_space<vmem>>, vector<8x128xf32>,
    } else {
    }
    %c0 = arith.constant 0 : index
    %c0_1 = arith.constant 0 : index
    %3 = vector.load %arg7[%c0, %c0_1] : memref<8x128xf32, #tpu.memory_space<vmem>>, vector<8x128xf32>
    %c0_2 = arith.constant 0 : index
    %c0_3 = arith.constant 0 : index
    %4 = vector.load %arg2[%c0_2, %c0_3] : memref<8x128xf32, #tpu.memory_space<vmem>>, vector<8x128xf32>
    %c0_4 = arith.constant 0 : index
    %c0_5 = arith.constant 0 : index
    %5 = vector.load %arg3[%c0_4, %c0_5] : memref<128x128xf32, #tpu.memory_space<vmem>>, vector<128x128xf32>
    %cst = arith.constant dense<0.000000e+00> : vector<8x128xf32>
    %6 = tpu.matmul %4, %5, %cst {dimension_numbers = #tpu.dot_dimension_numbers<[1], [0], [0], [1], [0, 0, 1, 1], [], []>} : vector<8x128xf32>, vector<128x128xf32>, vector<8x128xf32> -> vector<8x128xf32>
    %7 = arith.addf %3, %6 : vector<8x128xf32>
    %c0_6 = arith.constant 0 : index
    %c0_7 = arith.constant 0 : index
    %8 = vector.load %arg7[%c0_6, %c0_7] : memref<8x128xf32, #tpu.memory_space<vmem>>, vector<8x128xf32>
    tpu.vector_store %arg7[%c0_6, %c0_7], %7 {strides = array<i32>} : memref<8x128xf32, #tpu.memory_space<vmem>>, vector<8x128xf32>,
    %c0_i32_8 = arith.constant 0 : i32
    %9 = arith.cmpi eq, %arg1, %c0_i32_8 : i32
    %10 = arith.extui %9 : i1 to i32
    %c0_i32_9 = arith.constant 0 : i32
    %11 = arith.cmpi ne, %10, %c0_i32_9 : i32
    scf.if %11 {
      %c0_10 = arith.constant 0 : index
      %c0_11 = arith.constant 0 : index
      %12 = vector.load %arg7[%c0_10, %c0_11] : memref<8x128xf32, #tpu.memory_space<vmem>>, vector<8x128xf32>
      %c0_12 = arith.constant 0 : index
      %c0_13 = arith.constant 0 : index
      %13 = vector.load %arg4[%c0_12, %c0_13] : memref<1x128xf32, #tpu.memory_space<vmem>>, vector<1x128xf32>
      %c0_14 = arith.constant 0 : index
      %c0_15 = arith.constant 0 : index
      %14 = vector.load %arg5[%c0_14, %c0_15] : memref<1x128xf32, #tpu.memory_space<vmem>>, vector<1x128xf32>
      %cst_16 = arith.constant dense<0.000000e+00> : vector<128xf32>
      %15 = vector.multi_reduction <add>, %12, %cst_16 [0] : vector<8x128xf32> to vector<128xf32>
      %16 = vector.shape_cast %15 : vector<128xf32> to vector<1x128xf32>
      %cst_17 = arith.constant 1.250000e-01 : f32
      %17 = vector.broadcast %cst_17 : f32 to vector<1x128xf32>
      %18 = arith.mulf %16, %17 : vector<1x128xf32>
      %19 = arith.mulf %12, %12 : vector<8x128xf32>
      %cst_18 = arith.constant dense<0.000000e+00> : vector<128xf32>
      %20 = vector.multi_reduction <add>, %19, %cst_18 [0] : vector<8x128xf32> to vector<128xf32>
      %21 = vector.shape_cast %20 : vector<128xf32> to vector<1x128xf32>
      %cst_19 = arith.constant 1.250000e-01 : f32
      %22 = vector.broadcast %cst_19 : f32 to vector<1x128xf32>
      %23 = arith.mulf %21, %22 : vector<1x128xf32>
      %24 = arith.mulf %18, %18 : vector<1x128xf32>
      %25 = arith.subf %23, %24 : vector<1x128xf32>
      %cst_20 = arith.constant 0.000000e+00 : f32
      %26 = vector.broadcast %cst_20 : f32 to vector<1x128xf32>
      %27 = arith.maximumf %25, %26 : vector<1x128xf32>
      %cst_21 = arith.constant 9.99999974E-6 : f32
      %28 = vector.broadcast %cst_21 : f32 to vector<1x128xf32>
      %29 = arith.addf %27, %28 : vector<1x128xf32>
      %30 = math.rsqrt %29 : vector<1x128xf32>
      %31 = arith.mulf %13, %30 : vector<1x128xf32>
      %32 = arith.mulf %18, %31 : vector<1x128xf32>
      %33 = arith.subf %14, %32 : vector<1x128xf32>
      %34 = vector.broadcast %31 : vector<1x128xf32> to vector<8x128xf32>
      %35 = arith.mulf %12, %34 : vector<8x128xf32>
      %36 = vector.broadcast %33 : vector<1x128xf32> to vector<8x128xf32>
      %37 = arith.addf %35, %36 : vector<8x128xf32>
      %cst_22 = arith.constant 0.000000e+00 : f32
      %38 = vector.broadcast %cst_22 : f32 to vector<8x128xf32>
      %39 = arith.cmpf oge, %37, %38 : vector<8x128xf32>
      %cst_23 = arith.constant 2.000000e-01 : f32
      %40 = vector.broadcast %cst_23 : f32 to vector<8x128xf32>
      %41 = arith.mulf %40, %37 : vector<8x128xf32>
      %42 = arith.select %39, %37, %41 : vector<8x128xi1>, vector<8x128xf32>
      %c0_24 = arith.constant 0 : index
      %c0_25 = arith.constant 0 : index
      %43 = vector.load %arg6[%c0_24, %c0_25] : memref<8x128xf32, #tpu.memory_space<vmem>>, vector<8x128xf32>
      tpu.vector_store %arg6[%c0_24, %c0_25], %42 {strides = array<i32>} : memref<8x128xf32, #tpu.memory_space<vmem>>, vector<8x128xf32>,
    } else {
    }
    return
  }
  func.func @transform_0(%arg0: i32, %arg1: i32) -> (i32, i32) {
    %c0_i32 = arith.constant 0 : i32
    %c0_i32_0 = arith.constant 0 : i32
    return %c0_i32, %arg1 : i32, i32
  }
  func.func @transform_1(%arg0: i32, %arg1: i32) -> (i32, i32) {
    %c0_i32 = arith.constant 0 : i32
    return %arg1, %arg0 : i32, i32
  }
  func.func @transform_2(%arg0: i32, %arg1: i32) -> (i32, i32) {
    %c0_i32 = arith.constant 0 : i32
    %c0_i32_0 = arith.constant 0 : i32
    return %c0_i32, %arg0 : i32, i32
  }
  func.func @transform_3(%arg0: i32, %arg1: i32) -> (i32, i32) {
    %c0_i32 = arith.constant 0 : i32
    %c0_i32_0 = arith.constant 0 : i32
    return %c0_i32, %arg0 : i32, i32
  }
  func.func @transform_4(%arg0: i32, %arg1: i32) -> (i32, i32) {
    %c0_i32 = arith.constant 0 : i32
    %c0_i32_0 = arith.constant 0 : i32
    return %c0_i32, %arg0 : i32, i32
  }
}

</mosaic_0001>

<bundles_post_ra>
// kernel: linear_unit_forward.1
= control target key start
LH: loop header
LB: loop body
LE: loop exit
PB: predicated region body
PF: predicated region fallthrough
CT: control target
= control target key end

     0   :  { %v280_v3 = vmov 0.0|0.0   ;;  %vm281_vm0 = vmmov 0   ;;  %v282_v6 = vmov 0.0   ;;  %s378_s0 = inlined_call_operand.vmem [shape: f32[8,128], index: 0, kind: input, shape index: {}]   ;;  %s379_s1 = inlined_call_operand.vmem [shape: f32[128,128], index: 1, kind: input, shape index: {}]   ;;  %s380_s2 = inlined_call_operand.vmem [shape: f32[1,128], index: 2, kind: input, shape index: {}]   ;;  %s381_s3 = inlined_call_operand.vmem [shape: f32[1,128], index: 3, kind: input, shape index: {}]   ;;  %s382_s4 = inlined_call_operand.hbm [shape: f32[8,128], index: 4, kind: output, shape index: {}]  }
   0x1   :  { %v25_v0 = vld [vmem:[%s379_s1] sm:$0xff]  ;;  %v26_v1 = vld [vmem:[%s379_s1 + $0x8] sm:$0xff]  ;;  %v27_v2 = vld [vmem:[%s379_s1 + $0x10] sm:$0xff]  ;;  %226 = vmatprep.subr.bf16.mxu0 %v280_v3  ;;  %223 = vmatprep.mubr.msk.f32.mxu0 %vm281_vm0, %v282_v6 }
   0x2   :  { %v227_v4 = vpack.c.bf16 %v26_v1, %v25_v0  ;;  %v28_v5 = vld [vmem:[%s379_s1 + $0x18] sm:$0xff]  ;;  %v29_v8 = vld [vmem:[%s379_s1 + $0x20] sm:$0xff]  ;;  %v30_v9 = vld [vmem:[%s379_s1 + $0x28] sm:$0xff] }
   0x3   :  { %v230_v7 = vpack.c.bf16 %v28_v5, %v27_v2 }
   0x4   :  { %228 = vmatpush3.bf16.msra.mxu0 %v227_v4 }
   0x5   :  { %229 = vmatprep.subr.bf16.mxu0 %v280_v3 }
   0x6   :  { %9 = vsyncpa [#allocation4], 0  ;;  %v233_v10 = vpack.c.bf16 %v30_v9, %v29_v8  ;;  %v31_v11 = vld [vmem:[%s379_s1 + $0x30] sm:$0xff]  ;;  %v32_v12 = vld [vmem:[%s379_s1 + $0x38] sm:$0xff]  ;;  %v143_v48 = vlaneseq  ;;  %s283_s25 = smov [#allocation3]  }
   0x7   :  { %v236_v13 = vpack.c.bf16 %v32_v12, %v31_v11  ;;  %v33_v14 = vld [vmem:[%s379_s1 + $0x40] sm:$0xff]  ;;  %v34_v15 = vld [vmem:[%s379_s1 + $0x48] sm:$0xff]  ;;  %v35_v17 = vld [vmem:[%s379_s1 + $0x50] sm:$0xff]  ;;  %s166_s26 = sshll.u32 %s283_s25, 4  ;;  %s167_s26 = int_to_ptr.vmem [resolvable:$true] %s166_s26 }
   0x8   :  { %231 = vmatpush3.bf16.msra.mxu0 %v230_v7  ;;  %v239_v16 = vpack.c.bf16 %v34_v15, %v33_v14  ;;  %v36_v18 = vld [vmem:[%s379_s1 + $0x58] sm:$0xff]  ;;  %v37_v20 = vld [vmem:[%s379_s1 + $0x60] sm:$0xff]  ;;  %v38_v21 = vld [vmem:[%s379_s1 + $0x68] sm:$0xff]  ;;  %v144_v49 = vshrl.u32 %v143_v48, 7  ;;  %p261_p1 = scmp.lt.s32.totalorder %s167_s26, %s167_s26 }
   0x9   :  { %232 = vmatprep.subr.bf16.mxu0 %v280_v3  ;;  %v242_v19 = vpack.c.bf16 %v36_v18, %v35_v17  ;;  %v245_v22 = vpack.c.bf16 %v38_v21, %v37_v20  ;;  %v39_v23 = vld [vmem:[%s379_s1 + $0x70] sm:$0xff]  ;;  %v40_v24 = vld [vmem:[%s379_s1 + $0x78] sm:$0xff]  ;;  %v24_v26 = vld [vmem:[%s378_s0] sm:$0xff] }
   0xa   :  { %v248_v25 = vpack.c.bf16 %v40_v24, %v39_v23  ;;  %v117_v50 = vld [vmem:[%s380_s2] sm:$0x1]  ;;  %v145_v51 = vsub.s32 0, %v144_v49  ;;  %s256_s2 = scalar_lea.vmem %s167_s26, 128 }
   0xb   :  { %v118_v54 = vld [vmem:[%s381_s3] sm:$0x1]  ;;  %p257_p0 = scmp.ne.s32.totalorder %s167_s26, %s256_s2  ;;  %p262_p2 = scmp.lt.s32.totalorder %s256_s2, %s256_s2 }
   0xc   :  { %234 = vmatpush3.bf16.msra.mxu0 %v233_v10 }
   0xd   :  { %235 = vmatprep.subr.bf16.mxu0 %v280_v3  ;;  %p263_p3 = por %p262_p2, %p261_p1 }
   0xf   :  { %p264_p4 = pnand %p263_p3, %p257_p0 }
  0x10   :  { %237 = vmatpush3.bf16.msra.mxu0 %v236_v13 }
  0x11   :  { %238 = vmatprep.subr.bf16.mxu0 %v280_v3 }
  0x14   :  { %240 = vmatpush3.bf16.msra.mxu0 %v239_v16 }
  0x15   :  { %241 = vmatprep.subr.bf16.mxu0 %v280_v3 }
  0x18   :  { %243 = vmatpush3.bf16.msra.mxu0 %v242_v19 }
  0x19   :  { %244 = vmatprep.subr.bf16.mxu0 %v280_v3 }
  0x1c   :  { %246 = vmatpush3.bf16.msra.mxu0 %v245_v22 }
  0x1d   :  { %247 = vmatprep.subr.bf16.mxu0 %v280_v3 }
  0x20   :  { %249 = vmatpush3.bf16.msra.mxu0 %v248_v25 }
  0x23   :  { %224 = vmatmul.mubr.f32.vlgmr.msra.gmra.mrb[0].mxu0 %v24_v26 }
  0xf6   :  { %v107_v27 = vpop.f32.mrb[0].mxu0 }
  0xf7   :  { %v119_v28 = vrot.slane %v107_v27, 4  ;;  %v126_v29 = vmul.f32 %v107_v27, %v107_v27  ;;  %v225_v30 = vpop.f32.mrb[1].mxu0 }
  0xf9   :  { %v120_v31 = vadd.f32 %v119_v28, %v107_v27  ;;  %v127_v32 = vrot.slane %v126_v29, 4 }
  0xfb   :  { %v121_v33 = vrot.slane %v120_v31, 2  ;;  %v128_v34 = vadd.f32 %v127_v32, %v126_v29 }
  0xfd   :  { %v122_v35 = vadd.f32 %v121_v33, %v120_v31  ;;  %v129_v36 = vrot.slane %v128_v34, 2 }
  0xff   :  { %v123_v37 = vrot.slane %v122_v35, 1  ;;  %v130_v38 = vadd.f32 %v129_v36, %v128_v34 }
 0x101   :  { %v124_v39 = vadd.f32 %v123_v37, %v122_v35  ;;  %v131_v40 = vrot.slane %v130_v38, 1 }
 0x103   :  { %v125_v41 = vmul.f32 0.125, %v124_v39  ;;  %v132_v42 = vadd.f32 %v131_v40, %v130_v38 }
 0x105   :  { %v133_v43 = vmul.f32 0.125, %v132_v42  ;;  %v134_v44 = vmul.f32 %v125_v41, %v125_v41 }
 0x107   :  { %v135_v45 = vsub.f32 %v133_v43, %v134_v44 }
 0x109   :  { %v136_v46 = vmax.f32 %v135_v45, 0.0 }
 0x10b   :  { %v137_v47 = vadd.f32 1e-05, %v136_v46 }
 0x10d   :  { %254 = vrsqrt.f32 %v137_v47 }
 0x117   :  { %v255_v52 = vpop.eup %254 }
 0x118   :  { %v139_v53 = vmul.f32 %v255_v52, %v117_v50 }
 0x11a   :  { %v140_v55 = vmul.f32 %v139_v53, %v125_v41  ;;  %v146_v56 = vrot.slane %v139_v53, %v145_v51 }
 0x11c   :  { %v141_v57 = vsub.f32 %v118_v54, %v140_v55  ;;  %v148_v58 = vmul.f32 %v146_v56, %v107_v27 }
 0x11e   :  { %v153_v59 = vrot.slane %v141_v57, %v145_v51 }
 0x120   :  { %v155_v60 = vadd.f32 %v153_v59, %v148_v58 }
 0x122   :  { %vm156_vm1 = vcmp.ge.f32.partialorder %v155_v60, 0.0  ;;  %v157_v61 = vmul.f32 0.2, %v155_v60 }
 0x124   :  { %v158_v62 = vsel %vm156_vm1, %v155_v60, %v157_v61 }
 0x125   :  { %159 = vst [vmem:[#allocation3] sm:$0xff] %v158_v62 }
 0x126   :  { %267 = shalt.err (!%p264_p4)
}
 0x127   :  { %s268_s28 = scalar_lea.hbm %s382_s4, 128 }
 0x128   :  { %p269_p5 = scmp.ne.s32.totalorder %s382_s4, %s268_s28  ;;  %p272_p6 = scmp.lt.u32.totalorder %s268_s28, %s382_s4 }
 0x12a   :  { %p274_p7 = pnand %p272_p6, %p269_p5 }
 0x12c   :  { %277 = shalt.err (!%p274_p7)
}
 0x12d   :  { %169 = dma.vmem_to_hbm [thread:$0]  %s167_s26, 128, %s382_s4, [#allocation4]  }
 0x12e   :  { %278 = dma.done.wait [#allocation4], 128  }
 0x12f   :  { %279 = vsyncadd [#allocation4], 4294967168 }
 0x130   :  { %173 = vsyncpa [#allocation4], 1 }

</bundles_post_ra>
